<compile_context>
chip_gen: v7x
topology: tpu7x:2x2x1
jax: 0.10.0
libtpu: 0.0.40
codegen_flags: <defaults>
</compile_context>

<pallas_src>
import math

import jax
import jax.numpy as jnp
from jax.experimental import pallas as pl
from jax.experimental.pallas import tpu as pltpu


# ----------------------------------------------------------------------------
# Kernel
# ----------------------------------------------------------------------------
def _qnet_fused_kernel(s_ref, a_ref,
                       w1s_ref, w1a_ref, b1_ref,
                       w2_ref, b2_ref,
                       w3_ref, b3_ref,
                       q_ref):
    # Layer 1: twin branches fused along the output dim; state/action concat
    # folded into two matmuls over the split K dimension.
    h = (jnp.dot(s_ref[...], w1s_ref[...], preferred_element_type=jnp.float32)
         + jnp.dot(a_ref[...], w1a_ref[...], preferred_element_type=jnp.float32)
         + b1_ref[...])
    h = jnp.maximum(h, 0.0)
    # Layer 2: block-diagonal weights keep the two branches independent.
    h = jnp.dot(h, w2_ref[...], preferred_element_type=jnp.float32) + b2_ref[...]
    h = jnp.maximum(h, 0.0)
    # Output layer: column 0 = q1, column 1 = q2.
    q = jnp.dot(h, w3_ref[...], preferred_element_type=jnp.float32) + b3_ref[...]
    q_ref[...] = q.astype(q_ref.dtype)


# ----------------------------------------------------------------------------
# Wrapper
# ----------------------------------------------------------------------------
def qnetwork_forward(state, action, fused, *, tile_b=256):
    """Fused twin-Q forward. `fused` comes from pack_qnetwork_params()."""
    batch, num_inputs = state.shape
    num_actions = action.shape[1]
    h2 = fused["w2"].shape[0]          # 2 * hidden_dim

    tb = min(tile_b, batch)
    grid = (pl.cdiv(batch, tb),)

    # Weights / biases: one full resident block each (re-used across the grid).
    def _full(shape):
        return pl.BlockSpec(shape, lambda i: (0, 0))

    out = pl.pallas_call(
        _qnet_fused_kernel,
        out_shape=jax.ShapeDtypeStruct((batch, 2), jnp.float32),
        grid=grid,
        in_specs=[
            pl.BlockSpec((tb, num_inputs), lambda i: (i, 0)),   # state tile
            pl.BlockSpec((tb, num_actions), lambda i: (i, 0)),  # action tile
            _full((num_inputs, h2)),                            # W1s
            _full((num_actions, h2)),                           # W1a
            _full((1, h2)),                                     # b1 fused
            _full((h2, h2)),                                    # W2 block-diag
            _full((1, h2)),                                     # b2 fused
            _full((h2, 2)),                                     # W3 block-diag
            _full((1, 2)),                                      # b3 fused
        ],
        out_specs=pl.BlockSpec((tb, 2), lambda i: (i, 0)),
        compiler_params=pltpu.CompilerParams(
            dimension_semantics=("parallel",)),
    )(state, action,
      fused["w1s"], fused["w1a"], fused["b1"],
      fused["w2"], fused["b2"],
      fused["w3"], fused["b3"])

    q1 = out[:, 0:1]
    q2 = out[:, 1:2]
    return q1, q2


# ----------------------------------------------------------------------------
# Parameter init (matches PyTorch xavier_uniform_ + zero bias) and fusing
# ----------------------------------------------------------------------------
def _xavier_uniform(key, fan_in, fan_out):
    bound = math.sqrt(6.0 / (fan_in + fan_out))
    return jax.random.uniform(key, (fan_in, fan_out), jnp.float32,
                              minval=-bound, maxval=bound)


def init_qnetwork_params(key, num_inputs, num_actions, hidden_dim):
    d_in = num_inputs + num_actions
    keys = jax.random.split(key, 6)
    return {
        "w1": _xavier_uniform(keys[0], d_in, hidden_dim),
        "b1": jnp.zeros((1, hidden_dim), jnp.float32),
        "w2": _xavier_uniform(keys[1], hidden_dim, hidden_dim),
        "b2": jnp.zeros((1, hidden_dim), jnp.float32),
        "w3": _xavier_uniform(keys[2], hidden_dim, 1),
        "b3": jnp.zeros((1, 1), jnp.float32),
        "w4": _xavier_uniform(keys[3], d_in, hidden_dim),
        "b4": jnp.zeros((1, hidden_dim), jnp.float32),
        "w5": _xavier_uniform(keys[4], hidden_dim, hidden_dim),
        "b5": jnp.zeros((1, hidden_dim), jnp.float32),
        "w6": _xavier_uniform(keys[5], hidden_dim, 1),
        "b6": jnp.zeros((1, 1), jnp.float32),
    }


def _block_diag(a, b):
    za = jnp.zeros((a.shape[0], b.shape[1]), a.dtype)
    zb = jnp.zeros((b.shape[0], a.shape[1]), b.dtype)
    top = jnp.concatenate([a, za], axis=1)
    bot = jnp.concatenate([zb, b], axis=1)
    return jnp.concatenate([top, bot], axis=0)


def pack_qnetwork_params(params, num_inputs):
    """Pack twin-branch params into the fused layout (do this once per update).

    TODO(synk): a single flat param buffer (1 DMA) would need sub-(8,128)
    aligned in-kernel slices; kept as 7 fused arrays to stay layout-clean.
    """
    w1f = jnp.concatenate([params["w1"], params["w4"]], axis=1)   # (d_in, 2H)
    return {
        "w1s": w1f[:num_inputs],                                  # (ni, 2H)
        "w1a": w1f[num_inputs:],                                  # (na, 2H)
        "b1": jnp.concatenate([params["b1"], params["b4"]], axis=1),
        "w2": _block_diag(params["w2"], params["w5"]),            # (2H, 2H)
        "b2": jnp.concatenate([params["b2"], params["b5"]], axis=1),
        "w3": _block_diag(params["w3"], params["w6"]),            # (2H, 2)
        "b3": jnp.concatenate([params["b3"], params["b6"]], axis=1),
    }


# ----------------------------------------------------------------------------
# Pure-JAX reference (unfused, mirrors the PyTorch module exactly)
# ----------------------------------------------------------------------------
def qnetwork_reference(state, action, params):
    xu = jnp.concatenate([state, action], axis=1)
    h1 = jax.nn.relu(xu @ params["w1"] + params["b1"])
    h1 = jax.nn.relu(h1 @ params["w2"] + params["b2"])
    q1 = h1 @ params["w3"] + params["b3"]
    h2 = jax.nn.relu(xu @ params["w4"] + params["b4"])
    h2 = jax.nn.relu(h2 @ params["w5"] + params["b5"])
    q2 = h2 @ params["w6"] + params["b6"]
    return q1, q2


if __name__ == "__main__":
    batch, num_inputs, num_actions, hidden_dim = 2, 8, 4, 32

    key = jax.random.PRNGKey(0)
    k_state, k_action, k_params = jax.random.split(key, 3)

    state = jax.random.normal(k_state, (batch, num_inputs), jnp.float32)
    action = jax.random.normal(k_action, (batch, num_actions), jnp.float32)
    params = init_qnetwork_params(k_params, num_inputs, num_actions, hidden_dim)
    fused = pack_qnetwork_params(params, num_inputs)

    # Small-shape check (single grid step).
    q1, q2 = qnetwork_forward(state, action, fused)
    q1 = jax.block_until_ready(q1)
    q2 = jax.block_until_ready(q2)
    q1_ref, q2_ref = qnetwork_reference(state, action, params)
    assert q1.shape == (batch, 1) and q2.shape == (batch, 1)
    assert jnp.allclose(q1, q1_ref, atol=1e-5, rtol=1e-5)
    assert jnp.allclose(q2, q2_ref, atol=1e-5, rtol=1e-5)

    # Exercise the batch-tiled grid path (grid=(2,)) with a larger batch.
    big_b = 256
    ks, ka = jax.random.split(jax.random.PRNGKey(1))
    state_b = jax.random.normal(ks, (big_b, num_inputs), jnp.float32)
    action_b = jax.random.normal(ka, (big_b, num_actions), jnp.float32)
    q1b, q2b = qnetwork_forward(state_b, action_b, fused, tile_b=128)
    q1b = jax.block_until_ready(q1b)
    q2b = jax.block_until_ready(q2b)
    q1b_ref, q2b_ref = qnetwork_reference(state_b, action_b, params)
    assert jnp.allclose(q1b, q1b_ref, atol=1e-5, rtol=1e-5)
    assert jnp.allclose(q2b, q2b_ref, atol=1e-5, rtol=1e-5)

    print("KERNEL_OK")
</pallas_src>

<mosaic_0001>
module attributes {stable_mosaic.version = 11 : i64} {
  func.func @_qnet_fused_kernel(%arg0: i32, %arg1: memref<2x8xf32, #tpu.memory_space<vmem>>, %arg2: memref<2x4xf32, #tpu.memory_space<vmem>>, %arg3: memref<8x64xf32, #tpu.memory_space<vmem>>, %arg4: memref<4x64xf32, #tpu.memory_space<vmem>>, %arg5: memref<1x64xf32, #tpu.memory_space<vmem>>, %arg6: memref<64x64xf32, #tpu.memory_space<vmem>>, %arg7: memref<1x64xf32, #tpu.memory_space<vmem>>, %arg8: memref<64x2xf32, #tpu.memory_space<vmem>>, %arg9: memref<1x2xf32, #tpu.memory_space<vmem>>, %arg10: memref<2x2xf32, #tpu.memory_space<vmem>>) attributes {dimension_semantics = [#tpu.dimension_semantics<parallel>], iteration_bounds = array<i64: 1>, scalar_prefetch = 0 : i64, scratch_operands = 0 : i64, tpu.core_type = #tpu.core_type<tc>, window_params = [{transform_indices = @transform_0, window_bounds = array<i64: 2, 8>}, {transform_indices = @transform_1, window_bounds = array<i64: 2, 4>}, {pipeline_mode = #tpu.pipeline_mode<synchronous>, transform_indices = @transform_2, window_bounds = array<i64: 8, 64>}, {pipeline_mode = #tpu.pipeline_mode<synchronous>, transform_indices = @transform_3, window_bounds = array<i64: 4, 64>}, {pipeline_mode = #tpu.pipeline_mode<synchronous>, transform_indices = @transform_4, window_bounds = array<i64: 1, 64>}, {pipeline_mode = #tpu.pipeline_mode<synchronous>, transform_indices = @transform_5, window_bounds = array<i64: 64, 64>}, {pipeline_mode = #tpu.pipeline_mode<synchronous>, transform_indices = @transform_6, window_bounds = array<i64: 1, 64>}, {pipeline_mode = #tpu.pipeline_mode<synchronous>, transform_indices = @transform_7, window_bounds = array<i64: 64, 2>}, {pipeline_mode = #tpu.pipeline_mode<synchronous>, transform_indices = @transform_8, window_bounds = array<i64: 1, 2>}, {transform_indices = @transform_9, window_bounds = array<i64: 2, 2>}]} {
    %c0 = arith.constant 0 : index
    %c0_0 = arith.constant 0 : index
    %0 = vector.load %arg1[%c0, %c0_0] : memref<2x8xf32, #tpu.memory_space<vmem>>, vector<2x8xf32>
    %c0_1 = arith.constant 0 : index
    %c0_2 = arith.constant 0 : index
    %1 = vector.load %arg3[%c0_1, %c0_2] : memref<8x64xf32, #tpu.memory_space<vmem>>, vector<8x64xf32>
    %cst = arith.constant dense<0.000000e+00> : vector<2x64xf32>
    %2 = tpu.matmul %0, %1, %cst {dimension_numbers = #tpu.dot_dimension_numbers<[1], [0], [0], [1], [0, 0, 1, 1], [], []>} : vector<2x8xf32>, vector<8x64xf32>, vector<2x64xf32> -> vector<2x64xf32>
    %c0_3 = arith.constant 0 : index
    %c0_4 = arith.constant 0 : index
    %3 = vector.load %arg2[%c0_3, %c0_4] : memref<2x4xf32, #tpu.memory_space<vmem>>, vector<2x4xf32>
    %c0_5 = arith.constant 0 : index
    %c0_6 = arith.constant 0 : index
    %4 = vector.load %arg4[%c0_5, %c0_6] : memref<4x64xf32, #tpu.memory_space<vmem>>, vector<4x64xf32>
    %cst_7 = arith.constant dense<0.000000e+00> : vector<2x64xf32>
    %5 = tpu.matmul %3, %4, %cst_7 {dimension_numbers = #tpu.dot_dimension_numbers<[1], [0], [0], [1], [0, 0, 1, 1], [], []>} : vector<2x4xf32>, vector<4x64xf32>, vector<2x64xf32> -> vector<2x64xf32>
    %6 = arith.addf %2, %5 : vector<2x64xf32>
    %c0_8 = arith.constant 0 : index
    %c0_9 = arith.constant 0 : index
    %7 = vector.load %arg5[%c0_8, %c0_9] : memref<1x64xf32, #tpu.memory_space<vmem>>, vector<1x64xf32>
    %8 = vector.broadcast %7 : vector<1x64xf32> to vector<2x64xf32>
    %9 = arith.addf %6, %8 : vector<2x64xf32>
    %cst_10 = arith.constant 0.000000e+00 : f32
    %10 = vector.broadcast %cst_10 : f32 to vector<2x64xf32>
    %11 = arith.maximumf %9, %10 : vector<2x64xf32>
    %c0_11 = arith.constant 0 : index
    %c0_12 = arith.constant 0 : index
    %12 = vector.load %arg6[%c0_11, %c0_12] : memref<64x64xf32, #tpu.memory_space<vmem>>, vector<64x64xf32>
    %cst_13 = arith.constant dense<0.000000e+00> : vector<2x64xf32>
    %13 = tpu.matmul %11, %12, %cst_13 {dimension_numbers = #tpu.dot_dimension_numbers<[1], [0], [0], [1], [0, 0, 1, 1], [], []>} : vector<2x64xf32>, vector<64x64xf32>, vector<2x64xf32> -> vector<2x64xf32>
    %c0_14 = arith.constant 0 : index
    %c0_15 = arith.constant 0 : index
    %14 = vector.load %arg7[%c0_14, %c0_15] : memref<1x64xf32, #tpu.memory_space<vmem>>, vector<1x64xf32>
    %15 = vector.broadcast %14 : vector<1x64xf32> to vector<2x64xf32>
    %16 = arith.addf %13, %15 : vector<2x64xf32>
    %cst_16 = arith.constant 0.000000e+00 : f32
    %17 = vector.broadcast %cst_16 : f32 to vector<2x64xf32>
    %18 = arith.maximumf %16, %17 : vector<2x64xf32>
    %c0_17 = arith.constant 0 : index
    %c0_18 = arith.constant 0 : index
    %19 = vector.load %arg8[%c0_17, %c0_18] : memref<64x2xf32, #tpu.memory_space<vmem>>, vector<64x2xf32>
    %cst_19 = arith.constant dense<0.000000e+00> : vector<2x2xf32>
    %20 = tpu.matmul %18, %19, %cst_19 {dimension_numbers = #tpu.dot_dimension_numbers<[1], [0], [0], [1], [0, 0, 1, 1], [], []>} : vector<2x64xf32>, vector<64x2xf32>, vector<2x2xf32> -> vector<2x2xf32>
    %c0_20 = arith.constant 0 : index
    %c0_21 = arith.constant 0 : index
    %21 = vector.load %arg9[%c0_20, %c0_21] : memref<1x2xf32, #tpu.memory_space<vmem>>, vector<1x2xf32>
    %22 = vector.broadcast %21 : vector<1x2xf32> to vector<2x2xf32>
    %23 = arith.addf %20, %22 : vector<2x2xf32>
    %c0_22 = arith.constant 0 : index
    %c0_23 = arith.constant 0 : index
    %24 = vector.load %arg10[%c0_22, %c0_23] : memref<2x2xf32, #tpu.memory_space<vmem>>, vector<2x2xf32>
    tpu.vector_store %arg10[%c0_22, %c0_23], %23 {strides = array<i32>} : memref<2x2xf32, #tpu.memory_space<vmem>>, vector<2x2xf32>,
    return
  }
  func.func @transform_0(%arg0: i32) -> (i32, i32) {
    %c0_i32 = arith.constant 0 : i32
    %c0_i32_0 = arith.constant 0 : i32
    return %arg0, %c0_i32 : i32, i32
  }
  func.func @transform_1(%arg0: i32) -> (i32, i32) {
    %c0_i32 = arith.constant 0 : i32
    %c0_i32_0 = arith.constant 0 : i32
    return %arg0, %c0_i32 : i32, i32
  }
  func.func @transform_2(%arg0: i32) -> (i32, i32) {
    %c0_i32 = arith.constant 0 : i32
    %c0_i32_0 = arith.constant 0 : i32
    %c0_i32_1 = arith.constant 0 : i32
    return %c0_i32, %c0_i32_0 : i32, i32
  }
  func.func @transform_3(%arg0: i32) -> (i32, i32) {
    %c0_i32 = arith.constant 0 : i32
    %c0_i32_0 = arith.constant 0 : i32
    %c0_i32_1 = arith.constant 0 : i32
    return %c0_i32, %c0_i32_0 : i32, i32
  }
  func.func @transform_4(%arg0: i32) -> (i32, i32) {
    %c0_i32 = arith.constant 0 : i32
    %c0_i32_0 = arith.constant 0 : i32
    %c0_i32_1 = arith.constant 0 : i32
    return %c0_i32, %c0_i32_0 : i32, i32
  }
  func.func @transform_5(%arg0: i32) -> (i32, i32) {
    %c0_i32 = arith.constant 0 : i32
    %c0_i32_0 = arith.constant 0 : i32
    %c0_i32_1 = arith.constant 0 : i32
    return %c0_i32, %c0_i32_0 : i32, i32
  }
  func.func @transform_6(%arg0: i32) -> (i32, i32) {
    %c0_i32 = arith.constant 0 : i32
    %c0_i32_0 = arith.constant 0 : i32
    %c0_i32_1 = arith.constant 0 : i32
    return %c0_i32, %c0_i32_0 : i32, i32
  }
  func.func @transform_7(%arg0: i32) -> (i32, i32) {
    %c0_i32 = arith.constant 0 : i32
    %c0_i32_0 = arith.constant 0 : i32
    %c0_i32_1 = arith.constant 0 : i32
    return %c0_i32, %c0_i32_0 : i32, i32
  }
  func.func @transform_8(%arg0: i32) -> (i32, i32) {
    %c0_i32 = arith.constant 0 : i32
    %c0_i32_0 = arith.constant 0 : i32
    %c0_i32_1 = arith.constant 0 : i32
    return %c0_i32, %c0_i32_0 : i32, i32
  }
  func.func @transform_9(%arg0: i32) -> (i32, i32) {
    %c0_i32 = arith.constant 0 : i32
    %c0_i32_0 = arith.constant 0 : i32
    return %arg0, %c0_i32 : i32, i32
  }
}

</mosaic_0001>

<bundles_post_ra>
// kernel: tpu_custom_call.1
= control target key start
LH: loop header
LB: loop body
LE: loop exit
PB: predicated region body
PF: predicated region fallthrough
CT: control target
= control target key end

     0   :  { %vm41_vm0 = vcmask 1043456   ;;  %v522_v2 = vmov 0.0   ;;  %vm37_vm1 = vcmask 31744   ;;  %vm115_vm2 = vcmask 64512   ;;  %s661_s0 = inlined_call_operand.vmem [shape: f32[2,8], index: 0, kind: input, shape index: {}]   ;;  %s662_s1 = inlined_call_operand.vmem [shape: f32[2,4], index: 1, kind: input, shape index: {}]   ;;  %s663_s2 = inlined_call_operand.vmem [shape: f32[8,64], index: 2, kind: input, shape index: {}]   ;;  %s664_s3 = inlined_call_operand.vmem [shape: f32[4,64], index: 3, kind: input, shape index: {}]   ;;  %s665_s4 = inlined_call_operand.vmem [shape: f32[1,64], index: 4, kind: input, shape index: {}]   ;;  %s666_s5 = inlined_call_operand.vmem [shape: f32[64,64], index: 5, kind: input, shape index: {}]   ;;  %s667_s6 = inlined_call_operand.vmem [shape: f32[1,64], index: 6, kind: input, shape index: {}]   ;;  %s668_s7 = inlined_call_operand.vmem [shape: f32[64,2], index: 7, kind: input, shape index: {}]   ;;  %s669_s8 = inlined_call_operand.vmem [shape: f32[1,2], index: 8, kind: input, shape index: {}]   ;;  %s670_s9 = inlined_call_operand.hbm [shape: f32[2,2], index: 9, kind: output, shape index: {}]  }
   0x1   :  { %v36_v0 = vld [vmem:[%s664_s3] sm:$0xf]  ;;  %422 = vmatprep.subr.mxu0 %v522_v2  ;;  %427 = vmatprep.subr.mxu1 %v522_v2  ;;  %vm523_vm3 = vmmov 0   ;;  %v199_v6 = vld [vmem:[%s666_s5 + $0x8] sm:$0xff]  ;;  %v200_v8 = vld [vmem:[%s666_s5 + $0x10] sm:$0xff] }
   0x2   :  { %v34_v1 = vld [vmem:[%s663_s2] sm:$0xff]  ;;  %423 = vmatpush3.msk.msra.mxu0 %vm41_vm0, %v36_v0  ;;  %424 = vmatprep.mubr.msk.f32.mxu0 %vm523_vm3, %v522_v2  ;;  %v201_v9 = vld [vmem:[%s666_s5 + $0x18] sm:$0xff] }
   0x3   :  { %v35_v3 = vld [vmem:[%s662_s1] sm:$0x3]  ;;  %428 = vmatpush3.msra.mxu1 %v34_v1  ;;  %429 = vmatprep.mubr.msk.f32.mxu1 %vm523_vm3, %v522_v2 }
   0x4   :  { %v33_v4 = vld [vmem:[%s661_s0] sm:$0x3] }
   0x5   :  { %v198_v5 = vld [vmem:[%s666_s5] sm:$0xff] }
   0x6   :  { %v471_v7 = vpack.c.bf16 %v199_v6, %v198_v5 }
   0x7   :  { %14 = vsyncpa [#allocation3], 0  ;;  %425 = vmatmul.mubr.msk.f32.vlgmr.msra.gmra.mrb[0].mxu0 %vm37_vm1, %v35_v3  ;;  %430 = vmatmul.mubr.msk.f32.vlgmr.msra.gmra.mrb[0].mxu1 %vm115_vm2, %v33_v4  ;;  %v524_v10 = vmov 0.0|0.0   ;;  %v474_v11 = vpack.c.bf16 %v201_v9, %v200_v8  ;;  %v202_v12 = vld [vmem:[%s666_s5 + $0x20] sm:$0xff]  ;;  %v203_v13 = vld [vmem:[%s666_s5 + $0x28] sm:$0xff]  ;;  %vm213_vm4 = vcmask 523264  }
   0x8   :  { %470 = vmatprep.subr.bf16.mxu0 %v524_v10  ;;  %448 = vmatprep.mubr.msk.f32.mxu0 %vm523_vm3, %v522_v2  ;;  %v477_v14 = vpack.c.bf16 %v203_v13, %v202_v12  ;;  %v204_v15 = vld [vmem:[%s666_s5 + $0x30] sm:$0xff]  ;;  %v205_v16 = vld [vmem:[%s666_s5 + $0x38] sm:$0xff]  ;;  %v288_v18 = vld [vmem:[%s668_s7] sm:$0xff]  ;;  %s525_s24 = smov [#allocation2]   ;;  %vm376_vm5 = vcmask 9216  }
   0x9   :  { %472 = vmatpush3.bf16.msra.mxu0 %v471_v7  ;;  %482 = vmatprep.subr.bf16.mxu1 %v524_v10  ;;  %v480_v17 = vpack.c.bf16 %v205_v16, %v204_v15  ;;  %v289_v19 = vld [vmem:[%s668_s7 + $0x8] sm:$0xff]  ;;  %v290_v20 = vld [vmem:[%s668_s7 + $0x10] sm:$0xff]  ;;  %v291_v22 = vld [vmem:[%s668_s7 + $0x18] sm:$0xff]  ;;  %s384_s25 = sshll.u32 %s525_s24, 4  ;;  %s385_s25 = int_to_ptr.vmem [resolvable:$true] %s384_s25 }
   0xa   :  { %473 = vmatprep.subr.bf16.mxu0 %v524_v10  ;;  %467 = vmatprep.mubr.msk.f32.mxu1 %vm523_vm3, %v522_v2  ;;  %v483_v21 = vpack.c.bf16 %v289_v19, %v288_v18  ;;  %v486_v23 = vpack.c.bf16 %v291_v22, %v290_v20  ;;  %v292_v24 = vld [vmem:[%s668_s7 + $0x20] sm:$0xff]  ;;  %v293_v25 = vld [vmem:[%s668_s7 + $0x28] sm:$0xff]  ;;  %v294_v35 = vld [vmem:[%s668_s7 + $0x30] sm:$0xff]  ;;  %p503_p1 = scmp.lt.s32.totalorder %s385_s25, %s385_s25 }
   0xb   :  { %v489_v26 = vpack.c.bf16 %v293_v25, %v292_v24  ;;  %v395_v29 = vld [vmem:[%s665_s4] ss:$0 sm:$0xff]  ;;  %v295_v36 = vld [vmem:[%s668_s7 + $0x38] sm:$0xff]  ;;  %s498_s7 = scalar_lea.vmem %s385_s25, 32 }
   0xc   :  { %484 = vmatpush3.bf16.msra.mxu1 %v483_v21  ;;  %v492_v37 = vpack.c.bf16 %v295_v36, %v294_v35  ;;  %v396_v38 = vld [vmem:[%s667_s6] ss:$0 sm:$0xff]  ;;  %p499_p0 = scmp.ne.s32.totalorder %s385_s25, %s498_s7  ;;  %p504_p2 = scmp.lt.s32.totalorder %s498_s7, %s498_s7 }
   0xd   :  { %475 = vmatpush3.bf16.msra.mxu0 %v474_v11  ;;  %485 = vmatprep.subr.bf16.mxu1 %v524_v10  ;;  %v398_v43 = vld [vmem:[%s669_s8] ss:$0 sm:$0xff] }
   0xe   :  { %476 = vmatprep.subr.bf16.mxu0 %v524_v10  ;;  %p505_p3 = por %p504_p2, %p503_p1 }
  0x10   :  { %487 = vmatpush3.bf16.msra.mxu1 %v486_v23  ;;  %p506_p4 = pnand %p505_p3, %p499_p0 }
  0x11   :  { %478 = vmatpush3.bf16.msra.mxu0 %v477_v14  ;;  %488 = vmatprep.subr.bf16.mxu1 %v524_v10 }
  0x12   :  { %479 = vmatprep.subr.bf16.mxu0 %v524_v10 }
  0x14   :  { %490 = vmatpush3.bf16.msra.mxu1 %v489_v26 }
  0x15   :  { %481 = vmatpush3.bf16.msra.mxu0 %v480_v17  ;;  %491 = vmatprep.subr.bf16.mxu1 %v524_v10 }
  0x18   :  { %493 = vmatpush3.bf16.msra.mxu1 %v492_v37 }
  0xda   :  { %v111_v27 = vpop.f32.mrb[0].mxu0  ;;  %v185_v28 = vpop.f32.mrb[0].mxu1 }
  0xdb   :  { %v186_v30 = vadd.f32 %v185_v28, %v111_v27  ;;  %v426_v31 = vpop.f32.mrb[1].mxu0  ;;  %v431_v32 = vpop.f32.mrb[1].mxu1 }
  0xdd   :  { %v196_v33 = vadd.f32 %v395_v29, %v186_v30 }
  0xdf   :  { %v197_v34 = vmax.f32 %v196_v33, 0.0 }
  0xe1   :  { %449 = vmatmul.mubr.msk.f32.vlgmr.msra.gmra.mrb[2].mxu0 %vm213_vm4, %v197_v34 }
 0x1b4   :  { %v283_v39 = vpop.f32.mrb[2].mxu0 }
 0x1b5   :  { %v284_v40 = vadd.f32 %v396_v38, %v283_v39  ;;  %v450_v41 = vpop.f32.mrb[3].mxu0 }
 0x1b7   :  { %v287_v42 = vmax.f32 %v284_v40, 0.0 }
 0x1b9   :  { %468 = vmatmul.mubr.msk.f32.vlgmr.msra.gmra.mrb[2].mxu1 %vm213_vm4, %v287_v42 }
 0x28c   :  { %v372_v44 = vpop.f32.mrb[2].mxu1 }
 0x28d   :  { %v373_v45 = vadd.f32 %v398_v43, %v372_v44  ;;  %v469_v46 = vpop.f32.mrb[3].mxu1 }
 0x28f   :  { %377 = vst.msk [vmem:[#allocation2] sm:$0x3] %vm376_vm5, %v373_v45 }
 0x290   :  { %509 = shalt.err (!%p506_p4)
}
 0x291   :  { %s510_s27 = scalar_lea.hbm %s670_s9, 32 }
 0x292   :  { %p511_p5 = scmp.ne.s32.totalorder %s670_s9, %s510_s27  ;;  %p514_p6 = scmp.lt.u32.totalorder %s510_s27, %s670_s9 }
 0x294   :  { %p516_p7 = pnand %p514_p6, %p511_p5 }
 0x296   :  { %519 = shalt.err (!%p516_p7)
}
 0x297   :  { %387 = dma.vmem_to_hbm [thread:$0]  %s385_s25, 32, %s670_s9, [#allocation3]  }
 0x298   :  { %520 = dma.done.wait [#allocation3], 32  }
 0x299   :  { %521 = vsyncadd [#allocation3], 4294967264 }
 0x29a   :  { %391 = vsyncpa [#allocation3], 1 }

</bundles_post_ra>
